<compile_context>
chip_gen: v6e
topology: v6e:2x2x1
jax: 0.10.0
libtpu: 0.0.40
codegen_flags: <defaults>
</compile_context>

<pallas_src>
import functools

import jax
import jax.numpy as jnp
from jax import lax
from jax.experimental import pallas as pl
from jax.experimental.pallas import tpu as pltpu

_LANE = 128


def _round_up(x, m):
    return (x + m - 1) // m * m


def _vmem_budget_bytes():
    """Generation-aware VMEM budget (~75% of physical capacity)."""
    cap = 64 * 1024 * 1024  # conservative default (v7x physical = 64 MiB)
    try:
        info = pltpu.get_tpu_info()
        c = int(getattr(info, "vmem_capacity_bytes", 0))
        if c > 0:
            cap = c
    except Exception:
        pass
    return int(0.75 * cap)


# ---------------------------------------------------------------------------
# Shared channel-attention math on lane-dense operands.
#   pooled_cols: (C, 2)  columns = [avg, max]   (float32)
#   w1t: (C, C_red)   w2: (C, C_red)            (original w2 layout, no transpose)
# Returns attention as a (C, 1) float32 column for the broadcast multiply.
# ---------------------------------------------------------------------------
def _channel_attention(pooled_cols, w1t, w2):
    # One MXU pass for BOTH avg/max branches: pooled^T @ w1t -> (2, C_red).
    h = lax.dot_general(
        pooled_cols, w1t,
        dimension_numbers=(((0,), (0,)), ((), ())),
        preferred_element_type=jnp.float32)                      # (2, C_red)
    h = jnp.maximum(h, 0.0)                                      # ReLU
    # w2 @ h^T without transposing anything: contract the C_red dims.
    logits = lax.dot_general(
        w2, h,
        dimension_numbers=(((1,), (1,)), ((), ())),
        preferred_element_type=jnp.float32)                      # (C, 2)
    return jax.nn.sigmoid(logits[:, 0:1] + logits[:, 1:2])       # (C, 1)


# ---------------------------------------------------------------------------
# Path A: fused single pass — x read from HBM exactly once per element.
# Full-extent (C, HW) blocks: no padding, no masking, no trailing slice.
# ---------------------------------------------------------------------------
def _fused_kernel(x_ref, w1t_ref, w2_ref, o_ref, *, hw_valid):
    x = x_ref[...]                                               # (C, HW)
    xf = x.astype(jnp.float32)                                   # f32 accumulation
    avg = jnp.sum(xf, axis=-1, keepdims=True) * (1.0 / float(hw_valid))  # (C, 1)
    mx = jnp.max(xf, axis=-1, keepdims=True)                     # (C, 1)
    pooled = jnp.concatenate([avg, mx], axis=1)                  # (C, 2)
    attn = _channel_attention(pooled, w1t_ref[...], w2_ref[...]) # (C, 1) f32
    o_ref[...] = (x * attn.astype(x.dtype)).astype(o_ref.dtype)


def _cbam_single_pass(x_flat, w1t, w2, hw_valid, *, vmem_limit,
                      single_buffered=False, donate=False):
    B, C, HW = x_flat.shape
    C_red = w1t.shape[1]
    itemsize = jnp.dtype(x_flat.dtype).itemsize

    def xspec(shape, imap):
        if single_buffered:
            # No cross-iteration overlap worth keeping (grid is tiny / B==1);
            # halving the buffering doubles the slab that fits VMEM (v7x).
            return pl.BlockSpec(shape, imap, pipeline_mode=pl.Buffered(1))
        return pl.BlockSpec(shape, imap)

    w_bytes = (w1t.size + w2.size) * jnp.dtype(w1t.dtype).itemsize
    cost = pl.CostEstimate(
        flops=int(B * (8 * C * C_red + 4 * C * HW)),
        transcendentals=int(B * C),
        bytes_accessed=int(2 * B * C * HW * itemsize + w_bytes),
    )

    kernel = functools.partial(_fused_kernel, hw_valid=hw_valid)
    return pl.pallas_call(
        kernel,
        out_shape=jax.ShapeDtypeStruct((B, C, HW), x_flat.dtype),
        grid_spec=pltpu.PrefetchScalarGridSpec(
            num_scalar_prefetch=0,
            grid=(B,),
            in_specs=[
                xspec((None, C, HW), lambda b: (b, 0, 0)),
                pl.BlockSpec(w1t.shape, lambda b: (0, 0)),
                pl.BlockSpec(w2.shape, lambda b: (0, 0)),
            ],
            out_specs=xspec((None, C, HW), lambda b: (b, 0, 0)),
        ),
        compiler_params=pltpu.CompilerParams(
            dimension_semantics=("parallel",),
            vmem_limit_bytes=int(vmem_limit),
        ),
        cost_estimate=cost,
        input_output_aliases={0: 0} if donate else {},
    )(x_flat, w1t, w2)


# ---------------------------------------------------------------------------
# Path B: HW-tiled two-pass fallback (bounded VMEM).  No padding: the final
# tile is ragged; both the sum and the max are masked on that tile only.
# ---------------------------------------------------------------------------
def _reduce_attn_kernel(x_ref, w1t_ref, w2_ref, attn_ref, sum_sc, max_sc, *,
                        hw_valid, tile_hw):
    t = pl.program_id(1)
    last = pl.num_programs(1) - 1

    @pl.when(t == 0)
    def _():
        sum_sc[...] = jnp.zeros_like(sum_sc)
        max_sc[...] = jnp.full_like(max_sc, -jnp.inf)

    x = x_ref[...].astype(jnp.float32)                           # (C, tile_hw)
    rem = hw_valid % tile_hw                                     # static python int

    def _accum(xs, xm):
        sum_sc[...] = sum_sc[...] + jnp.sum(xs, axis=-1, keepdims=True)
        max_sc[...] = jnp.maximum(max_sc[...],
                                  jnp.max(xm, axis=-1, keepdims=True))

    if rem == 0:
        _accum(x, x)
    else:
        # Only the final (ragged) tile needs masking: its out-of-bounds lanes
        # contain unspecified data.  Sum masks to 0, max masks to -inf.
        @pl.when(t < last)
        def _():
            _accum(x, x)

        @pl.when(t == last)
        def _():
            lane = lax.broadcasted_iota(jnp.int32, x.shape, 1)
            valid = lane < rem
            _accum(jnp.where(valid, x, 0.0), jnp.where(valid, x, -jnp.inf))

    @pl.when(t == last)
    def _():
        avg = sum_sc[...] * (1.0 / float(hw_valid))              # (C, 1)
        pooled = jnp.concatenate([avg, max_sc[...]], axis=1)     # (C, 2)
        attn_ref[...] = _channel_attention(pooled, w1t_ref[...], w2_ref[...])


def _scale_kernel(x_ref, attn_ref, o_ref):
    # x_ref: (C, tile_hw), attn_ref: (C, 1) f32 — broadcast multiply over lanes.
    x = x_ref[...]
    o_ref[...] = (x * attn_ref[...].astype(x.dtype)).astype(o_ref.dtype)


def _cbam_tiled(x_flat, w1t, w2, hw_valid, budget, tile_hw=None):
    B, C, HW = x_flat.shape
    C_red = w1t.shape[1]
    itemsize = jnp.dtype(x_flat.dtype).itemsize

    hw_cap = _round_up(HW, _LANE)
    # Largest tile keeping double-buffered in+out tiles inside ~half the budget.
    max_tile = max(_LANE, ((budget // 2) // (4 * C * itemsize)) // _LANE * _LANE)
    if tile_hw is None:
        tile_hw = max_tile
    else:
        # Guard tiny overrides: per-grid-step overhead dominates below ~512 lanes.
        tile_hw = max(tile_hw, 4 * _LANE)
    tile_hw = max(_LANE, min(tile_hw, max_tile, hw_cap))
    tile_hw = tile_hw // _LANE * _LANE
    n_tiles = pl.cdiv(HW, tile_hw)

    w_bytes = (w1t.size + w2.size) * jnp.dtype(w1t.dtype).itemsize
    tile_bytes = C * tile_hw * itemsize
    vmem_limit = int(min(max(4 * tile_bytes + 2 * w_bytes + (4 << 20), 32 << 20),
                         budget))

    reduce_kernel = functools.partial(
        _reduce_attn_kernel, hw_valid=hw_valid, tile_hw=tile_hw)

    # Pass 1: per-channel global sum/max + attention MLP (reads x once).
    # TODO(synk): v7x B==1 — add a parallel HW-split axis producing per-half
    # partial stats (combined in pass 2) so both TensorCores issue DMAs.
    attn = pl.pallas_call(
        reduce_kernel,
        out_shape=jax.ShapeDtypeStruct((B, C, 1), jnp.float32),
        grid_spec=pltpu.PrefetchScalarGridSpec(
            num_scalar_prefetch=0,
            grid=(B, n_tiles),
            in_specs=[
                pl.BlockSpec((None, C, tile_hw), lambda b, t: (b, 0, t)),
                pl.BlockSpec(w1t.shape, lambda b, t: (0, 0)),
                pl.BlockSpec(w2.shape, lambda b, t: (0, 0)),
            ],
            out_specs=pl.BlockSpec((None, C, 1), lambda b, t: (b, 0, 0)),
            scratch_shapes=[pltpu.VMEM((C, 1), jnp.float32),
                            pltpu.VMEM((C, 1), jnp.float32)],
        ),
        compiler_params=pltpu.CompilerParams(
            dimension_semantics=("parallel", "arbitrary"),
            vmem_limit_bytes=vmem_limit,
        ),
        cost_estimate=pl.CostEstimate(
            flops=int(B * (8 * C * C_red + 2 * C * HW)),
            transcendentals=int(B * C),
            bytes_accessed=int(B * C * HW * itemsize + w_bytes + B * C * 4),
        ),
    )(x_flat, w1t, w2)

    # Pass 2: broadcast multiply; both grid axes parallel (keeps both v7x TCs
    # busy even at B == 1).  Attention stays f32 until the in-kernel cast so
    # both paths are numerically consistent.
    out = pl.pallas_call(
        _scale_kernel,
        out_shape=jax.ShapeDtypeStruct((B, C, HW), x_flat.dtype),
        grid_spec=pltpu.PrefetchScalarGridSpec(
            num_scalar_prefetch=0,
            grid=(B, n_tiles),
            in_specs=[
                pl.BlockSpec((None, C, tile_hw), lambda b, t: (b, 0, t)),
                pl.BlockSpec((None, C, 1), lambda b, t: (b, 0, 0)),
            ],
            out_specs=pl.BlockSpec((None, C, tile_hw), lambda b, t: (b, 0, t)),
        ),
        compiler_params=pltpu.CompilerParams(
            dimension_semantics=("parallel", "parallel"),
            vmem_limit_bytes=vmem_limit,
        ),
        cost_estimate=pl.CostEstimate(
            flops=int(B * C * HW),
            transcendentals=0,
            bytes_accessed=int(2 * B * C * HW * itemsize + B * C * 4),
        ),
    )(x_flat, attn)

    return out


# ---------------------------------------------------------------------------
# Public wrapper.
# ---------------------------------------------------------------------------
def cbam_forward(x_nchw, w1, w2, *, donate_x=False, force_tiled=False,
                 tile_hw=None):
    """x_nchw: (B, C, H, W); w1: (C//r, C); w2: (C, C//r). Returns (B, C, H, W)."""
    B, C, H, W = x_nchw.shape
    C_red = w1.shape[0]
    assert w1.shape == (C_red, C) and w2.shape == (C, C_red)

    HW = H * W
    x_flat = x_nchw.reshape(B, C, HW)

    # w1 transposed once (tiny); w2 is consumed in its native (C, C_red) layout.
    w1t = jnp.transpose(w1)                                      # (C, C_red)

    itemsize = jnp.dtype(x_nchw.dtype).itemsize
    budget = _vmem_budget_bytes()
    w_bytes = (w1.size + w2.size) * jnp.dtype(w1.dtype).itemsize
    blk_bytes = C * HW * itemsize
    margin = 2 << 20
    needed_double = 4 * blk_bytes + 2 * w_bytes + margin   # default double buffering
    needed_single = 2 * blk_bytes + 2 * w_bytes + margin   # pl.Buffered(1)

    if not force_tiled and needed_double <= budget:
        out_flat = _cbam_single_pass(
            x_flat, w1t, w2, HW,
            vmem_limit=min(max(needed_double, 32 << 20), budget),
            single_buffered=False, donate=donate_x)
    elif not force_tiled and needed_single <= budget:
        # Slab fits only single-buffered: keep the one-HBM-pass path (v7x).
        out_flat = _cbam_single_pass(
            x_flat, w1t, w2, HW,
            vmem_limit=min(max(needed_single, 32 << 20), budget),
            single_buffered=True, donate=donate_x)
    else:
        # Bounded-VMEM fallback (costs one extra HBM read of x).
        out_flat = _cbam_tiled(x_flat, w1t, w2, HW, budget, tile_hw=tile_hw)

    return out_flat.reshape(B, C, H, W)


# TODO(synk): channels-last (NHWC) variant with C on the lane axis for tiny
# spatial maps (7x7/14x14, large C) — only pays if the caller supplies NHWC
# without an extra HBM transpose.


def _reference(x, w1, w2):
    # Pure-JAX reference of the PyTorch forward for validation.
    avg = jnp.mean(x, axis=(2, 3))                          # (B, C)
    mx = jnp.max(x, axis=(2, 3))                            # (B, C)

    def fc(v):                                              # v: (B, C)
        h = jnp.maximum(v @ w1.T, 0.0)                      # (B, C_red)
        return h @ w2.T                                     # (B, C)

    attn = jax.nn.sigmoid(fc(avg) + fc(mx))                 # (B, C)
    return x * attn[:, :, None, None]


if __name__ == "__main__":
    key = jax.random.PRNGKey(0)
    k_x, k_w1, k_w2, k_x2, k_x3 = jax.random.split(key, 5)

    B, C = 2, 8
    reduction = 4
    C_red = C // reduction

    # Deterministic synthetic weights for the two bias-free 1x1 convs.
    w1 = jax.random.normal(k_w1, (C_red, C), dtype=jnp.float32) * 0.1
    w2 = jax.random.normal(k_w2, (C, C_red), dtype=jnp.float32) * 0.1

    # 1) Fused single-pass path, H*W a multiple of 128.
    x = jax.random.normal(k_x, (B, C, 16, 16), dtype=jnp.float32)
    out = cbam_forward(x, w1, w2)
    jax.block_until_ready(out)
    assert jnp.allclose(out, _reference(x, w1, w2), atol=1e-5, rtol=1e-5), \
        "single-pass mismatch"

    # 2) Fused path with non-128-multiple H*W: no pad / no slice, Mosaic masks
    #    the ragged lane reductions.
    x2 = jax.random.normal(k_x2, (B, C, 14, 14), dtype=jnp.float32)
    out2 = cbam_forward(x2, w1, w2)
    jax.block_until_ready(out2)
    assert jnp.allclose(out2, _reference(x2, w1, w2), atol=1e-5, rtol=1e-5), \
        "ragged fused mismatch"

    # 3) Tiled two-pass fallback with multi-tile accumulation and a ragged
    #    final tile (40*40 = 1600 = 3*512 + 64 valid lanes).
    x3 = jax.random.normal(k_x3, (B, C, 40, 40), dtype=jnp.float32)
    out3 = cbam_forward(x3, w1, w2, force_tiled=True, tile_hw=512)
    jax.block_until_ready(out3)
    assert jnp.allclose(out3, _reference(x3, w1, w2), atol=1e-5, rtol=1e-5), \
        "tiled mismatch"

    print("KERNEL_OK")
</pallas_src>

<mosaic_0001>
module attributes {stable_mosaic.version = 11 : i64} {
  func.func @_fused_kernel(%arg0: i32, %arg1: memref<1x8x256xf32, #tpu.memory_space<vmem>>, %arg2: memref<8x2xf32, #tpu.memory_space<vmem>>, %arg3: memref<8x2xf32, #tpu.memory_space<vmem>>, %arg4: memref<1x8x256xf32, #tpu.memory_space<vmem>>) attributes {dimension_semantics = [#tpu.dimension_semantics<parallel>], iteration_bounds = array<i64: 2>, scalar_prefetch = 0 : i64, scratch_operands = 0 : i64, tpu.core_type = #tpu.core_type<tc>, window_params = [{transform_indices = @transform_0, window_bounds = array<i64: 1, 8, 256>}, {pipeline_mode = #tpu.pipeline_mode<synchronous>, transform_indices = @transform_1, window_bounds = array<i64: 8, 2>}, {pipeline_mode = #tpu.pipeline_mode<synchronous>, transform_indices = @transform_2, window_bounds = array<i64: 8, 2>}, {transform_indices = @transform_3, window_bounds = array<i64: 1, 8, 256>}]} {
    %c0 = arith.constant 0 : index
    %c0_0 = arith.constant 0 : index
    %c0_1 = arith.constant 0 : index
    %0 = vector.load %arg1[%c0, %c0_0, %c0_1] : memref<1x8x256xf32, #tpu.memory_space<vmem>>, vector<1x8x256xf32>
    %1 = vector.shape_cast %0 : vector<1x8x256xf32> to vector<8x256xf32>
    %cst = arith.constant dense<0.000000e+00> : vector<8xf32>
    %2 = vector.multi_reduction <add>, %1, %cst [1] : vector<8x256xf32> to vector<8xf32>
    %3 = vector.shape_cast %2 : vector<8xf32> to vector<8x1xf32>
    %cst_2 = arith.constant 3.906250e-03 : f32
    %4 = vector.broadcast %cst_2 : f32 to vector<8x1xf32>
    %5 = arith.mulf %3, %4 : vector<8x1xf32>
    %cst_3 = arith.constant dense<0xFF800000> : vector<8xf32>
    %6 = vector.multi_reduction <maximumf>, %1, %cst_3 [1] : vector<8x256xf32> to vector<8xf32>
    %7 = vector.shape_cast %6 : vector<8xf32> to vector<8x1xf32>
    %8 = tpu.concatenate %5, %7 in 1 : vector<8x1xf32>, vector<8x1xf32> -> vector<8x2xf32>
    %c0_4 = arith.constant 0 : index
    %c0_5 = arith.constant 0 : index
    %9 = vector.load %arg2[%c0_4, %c0_5] : memref<8x2xf32, #tpu.memory_space<vmem>>, vector<8x2xf32>
    %c0_6 = arith.constant 0 : index
    %c0_7 = arith.constant 0 : index
    %10 = vector.load %arg3[%c0_6, %c0_7] : memref<8x2xf32, #tpu.memory_space<vmem>>, vector<8x2xf32>
    %cst_8 = arith.constant dense<0.000000e+00> : vector<2x2xf32>
    %11 = tpu.matmul %8, %9, %cst_8 {dimension_numbers = #tpu.dot_dimension_numbers<[0], [0], [1], [1], [0, 1, 1, 1], [], []>} : vector<8x2xf32>, vector<8x2xf32>, vector<2x2xf32> -> vector<2x2xf32>
    %cst_9 = arith.constant 0.000000e+00 : f32
    %12 = vector.broadcast %cst_9 : f32 to vector<2x2xf32>
    %13 = arith.maximumf %11, %12 : vector<2x2xf32>
    %cst_10 = arith.constant dense<0.000000e+00> : vector<8x2xf32>
    %14 = tpu.matmul %10, %13, %cst_10 {dimension_numbers = #tpu.dot_dimension_numbers<[1], [1], [0], [0], [0, 0, 1, 0], [], []>} : vector<8x2xf32>, vector<2x2xf32>, vector<8x2xf32> -> vector<8x2xf32>
    %15 = vector.extract_strided_slice %14 {offsets = [0, 0], sizes = [8, 1], strides = [1, 1]} : vector<8x2xf32> to vector<8x1xf32>
    %16 = vector.extract_strided_slice %14 {offsets = [0, 1], sizes = [8, 1], strides = [1, 1]} : vector<8x2xf32> to vector<8x1xf32>
    %17 = arith.addf %15, %16 : vector<8x1xf32>
    %18 = arith.negf %17 : vector<8x1xf32>
    %19 = math.exp %18 : vector<8x1xf32>
    %cst_11 = arith.constant 1.000000e+00 : f32
    %20 = vector.broadcast %cst_11 : f32 to vector<8x1xf32>
    %21 = arith.addf %20, %19 : vector<8x1xf32>
    %22 = arith.divf %20, %21 : vector<8x1xf32>
    %23 = vector.broadcast %22 : vector<8x1xf32> to vector<8x256xf32>
    %24 = arith.mulf %1, %23 : vector<8x256xf32>
    %c0_12 = arith.constant 0 : index
    %c0_13 = arith.constant 0 : index
    %c0_14 = arith.constant 0 : index
    %25 = vector.load %arg4[%c0_12, %c0_13, %c0_14] : memref<1x8x256xf32, #tpu.memory_space<vmem>>, vector<1x8x256xf32>
    %26 = vector.shape_cast %25 : vector<1x8x256xf32> to vector<8x256xf32>
    %27 = vector.shape_cast %24 : vector<8x256xf32> to vector<1x8x256xf32>
    tpu.vector_store %arg4[%c0_12, %c0_13, %c0_14], %27 {strides = array<i32>} : memref<1x8x256xf32, #tpu.memory_space<vmem>>, vector<1x8x256xf32>,
    return
  }
  func.func @transform_0(%arg0: i32) -> (i32, i32, i32) {
    %c0_i32 = arith.constant 0 : i32
    %c0_i32_0 = arith.constant 0 : i32
    %c0_i32_1 = arith.constant 0 : i32
    return %arg0, %c0_i32, %c0_i32_0 : i32, i32, i32
  }
  func.func @transform_1(%arg0: i32) -> (i32, i32) {
    %c0_i32 = arith.constant 0 : i32
    %c0_i32_0 = arith.constant 0 : i32
    %c0_i32_1 = arith.constant 0 : i32
    return %c0_i32, %c0_i32_0 : i32, i32
  }
  func.func @transform_2(%arg0: i32) -> (i32, i32) {
    %c0_i32 = arith.constant 0 : i32
    %c0_i32_0 = arith.constant 0 : i32
    %c0_i32_1 = arith.constant 0 : i32
    return %c0_i32, %c0_i32_0 : i32, i32
  }
  func.func @transform_3(%arg0: i32) -> (i32, i32, i32) {
    %c0_i32 = arith.constant 0 : i32
    %c0_i32_0 = arith.constant 0 : i32
    %c0_i32_1 = arith.constant 0 : i32
    return %arg0, %c0_i32, %c0_i32_0 : i32, i32, i32
  }
}

</mosaic_0001>

<bundles_post_ra>
// kernel: tpu_custom_call.1
= control target key start
LH: loop header
LB: loop body
LE: loop exit
PB: predicated region body
PF: predicated region fallthrough
CT: control target
= control target key end

     0   :  { %8 = vsyncpa [#allocation3], 0  ;;  %s855_s0 = inlined_call_operand.hbm [shape: f32[2,8,256], index: 0, kind: input, shape index: {}]   ;;  %s856_s1 = inlined_call_operand.vmem [shape: f32[8,2], index: 1, kind: input, shape index: {}]   ;;  %s857_s2 = inlined_call_operand.vmem [shape: f32[8,2], index: 2, kind: input, shape index: {}]   ;;  %s858_s3 = inlined_call_operand.hbm [shape: f32[2,8,256], index: 3, kind: output, shape index: {}]  }
   0x1   :  { %10 = vsyncpa [#allocation3 + $0x1], 0 }
   0x2   :  { %11 = vsyncpa [#allocation4], 0 }
   0x3   :  { %13 = vsyncpa [#allocation4 + $0x1], 0  ;;  %s698_s12 = smov 0   ;;  %s700_s13 = smov 0  }
   0x4   :  { %s702_s14 = smov 0   ;;  %s704_s15 = smov 0  }
   0x5 LB: > { %s719_s16 = sadd.s32 4294967295, %s670_s15   ;;  %s489_s17 = sadd.s32 4294967294, %s670_s15   ;;  %s670_s15 = sphi %s704_s15, %s875_s15   ;;  %s666_s14 = sphi %s702_s14, %s874_s14   ;;  %s662_s13 = sphi %s700_s13, %s873_s13   ;;  %s658_s12 = sphi %s698_s12, %s872_s12  }
   0x6   : > { %s723_s18 = sadd.s32 1, %s670_s15   ;;  %s26_s19 = sadd.s32 1, %s666_s14 }
   0x7   : > { %s23_s20 = ssub.s32 %s670_s15, %s723_s18  ;;  %p33_p0 = scmp.ne.s32.totalorder %s666_s14, %s662_s13 }
   0x8   : > { %p24_p1 = scmp.eq.s32.totalorder %s23_s20, 0  ;;  %p34_p2 = scmp.eq.s32.totalorder %s670_s15, 0 }
   0x9   : > { %p39_p3 = scmp.ne.s32.totalorder %s662_s13, %s658_s12  ;;  %p40_p4 = scmp.eq.s32.totalorder %s719_s16, 0 }
   0xa   : > { %s735_s21 = scalar_select %p24_p1, %s666_s14, %s26_s19  }
   0xb   : > { %p737_p5 = por %p34_p2, %p33_p0  ;;  %p741_p6 = por %p40_p4, %p39_p3 }
   0xc   : > { %p105_p7 = scmp.eq.s32.totalorder %s719_s16, 1  ;;  %p111_p8 = scmp.eq.s32.totalorder %s489_s17, 1 }
   0xd   : > { %s862_s23 = scalar_select %p741_p6, 1, 0 }
   0xe   : > { %p535_p10 = scmp.lt.s32.totalorder %s670_s15, 2  ;;  %p748_p11 = por %p105_p7, %p33_p0 }
   0xf   : > { %p752_p12 = por %p111_p8, %p39_p3  ;;  %s137_s26 = sand.u32 1, %s666_s14  }
  0x10   : > { %s863_s24 = scalar_select %p748_p11, 1, 0 }
  0x11   : > { %s864_s25 = scalar_select %p752_p12, 1, 0 }
  0x12   : > { %s507_s27 = sshll.u32 %s670_s15, 8  ;;  %s492_s28 = sshll.u32 %s137_s26, 4 }
  0x13   : > { %s761_s4 = scalar_lea.hbm %s855_s0, %s507_s27  ;;  %s141_s5 = scalar_lea.vmem [#allocation2], %s492_s28 }
  0x14   : > { %s149_s6 = sshll.u32 %s141_s5, 4  ;;  %p765_p13 = pnand %p535_p10, %p737_p5  ;;  %s769_s6 = int_to_ptr.vmem [resolvable:$true] %s149_s6 }
  0x15   : > { %s138_s8 = scalar_lea.sflag [#allocation3], %s137_s26  ;;  %s578_s9 = scalar_lea.hbm %s761_s4, 256 }
  0x16   : > { %p579_p2 = scmp.ne.s32.totalorder %s761_s4, %s578_s9  ;;  %p580_p3 = pneg %p765_p13 }
  0x17   : > { %s583_s17 = scalar_lea.hbm %s855_s0, 512  ;;  %p584_p5 = scmp.lt.s32.totalorder %s761_s4, %s855_s0 }
  0x18   : > { %p581_p4 = pnand %p580_p3, %p579_p2  ;;  %p585_p8 = scmp.lt.s32.totalorder %s583_s17, %s578_s9 }
  0x1a   : > { %p582_p7 = pneg %p581_p4  ;;  %p586_p10 = por %p585_p8, %p584_p5 }
  0x1c   : > { %p587_p9 = pnand %p586_p10, %p582_p7 }
  0x1e   : > { %590 = shalt.err (!%p587_p9)
}
  0x1f   : > { %s591_s22 = scalar_lea.vmem %s769_s6, 256  ;;  %s672_s26 = smov [#allocation2]  }
  0x20   : > { %p592_p0 = scmp.ne.s32.totalorder %s769_s6, %s591_s22  ;;  %s596_s27 = sshll.u32 %s672_s26, 4  ;;  %s597_s27 = int_to_ptr.vmem [resolvable:$false] %s596_s27 }
  0x21   : > { %s598_s28 = scalar_lea.vmem %s597_s27, 512  ;;  %p599_p4 = scmp.lt.s32.totalorder %s769_s6, %s597_s27 }
  0x22   : > { %p594_p1 = pnand %p592_p0, %p580_p3  ;;  %p600_p12 = scmp.lt.s32.totalorder %s598_s28, %s591_s22 }
  0x24   : > { %p595_p2 = pneg %p594_p1  ;;  %p601_p11 = por %p600_p12, %p599_p4 }
  0x26   : > { %p602_p6 = pnand %p601_p11, %p595_p2 }
  0x28   : > { %605 = shalt.err (!%p602_p6)
}
  0x29   : > { %530 = dma.hbm_to_vmem [thread:$0]  (!%p765_p13), %s761_s4, 256, %s769_s6, %s138_s8  }
  0x2a   : > { %p866_p9 = scmp.lt.s32.totalorder %s670_s15, 3  ;;  %p867_p7 = scmp.ge.s32.totalorder %s670_s15, 1 }
  0x2c   : > { %p155_p0 = pnand %p867_p7, %p866_p9 }
  0x2d   : > { %s796_s29 = sand.u32 (!%p155_p0), 1, %s662_s13   ;;  %p868_p6 = scmp.ne.s32.totalorder (!%p155_p0), %s862_s23, 0 }
  0x2e   : > { %158 = sbr.rel (%p155_p0) target bundleno = 1002 (0x3ea), region = 32  ;;  %s496_s30 = sshll.u32 (!%p155_p0), %s796_s29, 4 }
  0x2f   : > { %s161_s5 = scalar_lea.sflag (!%p155_p0), [#allocation3], %s796_s29  ;;  %s164_s7 = scalar_lea.vmem (!%p155_p0), [#allocation2], %s496_s30 }
  0x33   : > { %649 = dma.done.wait (%p868_p6), %s161_s5, 256  }
  0x34   : > { %651 = vsyncadd (%p868_p6), %s161_s5, 4294967040  ;;  %v187_v0 = vld [vmem:[%s164_s7] sm:$0xff]  ;;  %v188_v1 = vld [vmem:[%s164_s7 + $0x8] sm:$0xff]  ;;  %v673_v5 = vmov 0.0   ;;  %vm674_vm0 = vmmov 0   ;;  %vm196_vm1 = vcmask 7168  }
  0x35   : > { %v189_v2 = vadd.f32 %v188_v1, %v187_v0  ;;  %v193_v3 = vmax.f32 %v187_v0, %v188_v1  ;;  %v198_v4 = vld [vmem:[%s856_s1] sm:$0xff]  ;;  %513 = vmatprep.subr.mxu0 %v673_v5  ;;  %515 = vmatprep.mubr.msk.f32.mxu0 %vm674_vm0, %v673_v5  ;;  %vm232_vm2 = vcmask 64512   ;;  %vm307_vm3 = vcmask 15360   ;;  %s675_s9 = smov 127   ;;  %s508_s10 = sshll.u32 %s719_s16, 8 }
  0x36   : > { %514 = vmatpush3.msra.mxu0 %v198_v4  ;;  %518 = vmatprep.subr.mxu1 %v673_v5  ;;  %v199_v14 = vld [vmem:[%s857_s2] sm:$0xff]  ;;  %v676_v17 = vmov 0   ;;  %s186_s11 = scalar_lea.vmem [#allocation5], %s496_s30  ;;  %s818_s22 = scalar_lea.hbm %s858_s3, %s508_s10 }
  0x37   : > { %190 = vadd.xlane.f32.xlu0 %v189_v2  ;;  %520 = vmatprep.mubr.msk.f32.mxu1 %vm674_vm0, %v673_v5  ;;  %s419_s17 = sshll.u32 %s186_s11, 4  ;;  %s405_s26 = scalar_lea.sflag [#allocation4], %s796_s29  ;;  %s420_s17 = int_to_ptr.vmem [resolvable:$true] %s419_s17 }
  0x38   : > { %573 = vset.pattern.permute.xlu0 %v676_v17  ;;  %s606_s27 = scalar_lea.vmem %s420_s17, 256  ;;  %p869_p12 = scmp.ne.s32.totalorder %s863_s24, 0 }
  0x39   : > { %p607_p11 = scmp.ne.s32.totalorder %s420_s17, %s606_s27  ;;  %s677_s16 = smov [#allocation5]  }
  0x3a   : > { %s610_s28 = sshll.u32 %s677_s16, 4  ;;  %s611_s28 = int_to_ptr.vmem [resolvable:$false] %s610_s28 }
  0x3b   : > { %194 = vmax.xlane.f32.xlu0 %v193_v3  ;;  %p608_p13 = pnand %p607_p11, %p869_p12  ;;  %s612_s30 = scalar_lea.vmem %s611_s28, 512 }
  0x3c   : > { %p613_p3 = scmp.lt.s32.totalorder %s420_s17, %s611_s28  ;;  %p614_p5 = scmp.lt.s32.totalorder %s612_s30, %s606_s27 }
  0x3d   : > { %p609_p1 = pneg %p608_p13 }
  0x3e   : > { %p615_p8 = por %p614_p5, %p613_p3 }
  0x40   : > { %p616_p10 = pnand %p615_p8, %p609_p1 }
  0xc0   : > { %v191_v6 = vpop.xlane.xlu0 %190 }
  0xc1   : > { %v192_v7 = vmul.f32 0.00390625, %v191_v6 }
  0xc4   : > { %v195_v8 = vpop.xlane.xlu0 %194 }
  0xc5   : > { %v197_v9 = vsel %vm196_vm1, %v192_v7, %v195_v8 }
  0xc6   : > { %200 = vxpose.xlu1.b32.start.end [1/1] (short) (narrow) %v197_v9, 8 }
 0x142   : > { %v216_v10 = vpop.trf.xlu1 }
 0x143   : > { %516 = vmatmul.mubr.msk.f32.vlgmr.msra.gmra.mxu0 %vm232_vm2, %v216_v10 }
 0x203   : > { %v302_v11 = vpop.f32.mrf.mxu0 }
 0x204   : > { %v306_v12 = vmax.f32 %v302_v11, 0.0 }
 0x205   : > { %v517_v13 = vpop.f32.mrf.mxu0 }
 0x206   : > { %519 = vmatpush3.xpose.msk.msra.mxu1 %vm307_vm3, %v306_v12 }
 0x209   : > { %521 = vmatmul.mubr.msk.f32.vlgmr.msra.gmra.mxu1 %vm307_vm3, %v199_v14 }
 0x2c9   : > { %v380_v15 = vpop.f32.mrf.mxu1 }
 0x2ca   : > { %385 = vrot.lane.b32.xlu1 %v380_v15, %s675_s9 }
 0x2cb   : > { %v522_v16 = vpop.f32.mrf.mxu1 }
 0x33c   : > { %v386_v18 = vpop.permute.xlu1 %385 }
 0x33d   : > { %v388_v19 = vadd.f32 %v386_v18, %v380_v15 }
 0x33f   : > { %v501_v20 = vmul.f32 -1.442695, %v388_v19 }
 0x341   : > { %574 = vpow2.f32 %v501_v20 }
 0x34e   : > { %v575_v21 = vpop.eup %574 }
 0x34f   : > { %v392_v22 = vadd.f32 1.0, %v575_v21 }
 0x351   : > { %576 = vrcp.f32 %v392_v22 }
 0x35e   : > { %v577_v23 = vpop.eup %576 }
 0x35f   : > { %397 = vperm.xlu0 %573, %v577_v23  }
 0x3da   : > { %v398_v24 = vpop.permute.xlu0 %397 }
 0x3db   : > { %v400_v25 = vmul.f32 %v398_v24, %v187_v0  ;;  %v401_v26 = vmul.f32 %v398_v24, %v188_v1 }
 0x3dd   : > { %402 = vst [vmem:[%s186_s11] sm:$0xff] %v400_v25  ;;  %403 = vst [vmem:[%s186_s11 + $0x8] sm:$0xff] %v401_v26 }
 0x3de   : > { %619 = shalt.err (!%p616_p10)
}
 0x3df   : > { %s620_s5 = scalar_lea.hbm %s818_s22, 256  ;;  %s624_s4 = scalar_lea.hbm %s858_s3, 512 }
 0x3e0   : > { %p621_p2 = scmp.ne.s32.totalorder %s818_s22, %s620_s5  ;;  %p625_p7 = scmp.lt.s32.totalorder %s818_s22, %s858_s3 }
 0x3e1   : > { %p626_p0 = scmp.lt.s32.totalorder %s624_s4, %s620_s5 }
 0x3e2   : > { %p622_p4 = pnand %p621_p2, %p869_p12 }
 0x3e3   : > { %p627_p6 = por %p626_p0, %p625_p7 }
 0x3e4   : > { %p623_p9 = pneg %p622_p4 }
 0x3e6   : > { %p628_p11 = pnand %p627_p6, %p623_p9 }
 0x3e8   : > { %631 = shalt.err (!%p628_p11)
}
 0x3e9   : > { %525 = dma.vmem_to_hbm [thread:$0]  (%p869_p12), %s420_s17, 256, %s818_s22, %s405_s26  }
 0x3ea PF: > { %s431_s8 = sand.u32 1, %s658_s12   ;;  %p870_p13 = scmp.ne.s32.totalorder %s864_s25, 0 }
 0x3eb   : > { %p871_p1 = scmp.ge.s32.totalorder %s670_s15, 2  ;;  %s432_s9 = scalar_lea.sflag [#allocation4], %s431_s8 }
 0x3ed   : > { %p532_p3 = pnand %p871_p1, %p870_p13 }
 0x3ef   : > { %p533_p5 = pneg %p532_p3 }
 0x3f1   : > { %653 = dma.done.wait (%p533_p5), %s432_s9, 256  }
 0x3f2   : > { %655 = vsyncadd (%p533_p5), %s432_s9, 4294967040  ;;  %p16_p8 = scmp.ge.s32.totalorder %s723_s18, 4   ;;  %s872_s12 = smov %s662_s13 }
 0x3f3   : > { %s873_s13 = smov %s666_s14  ;;  %s874_s14 = smov %s735_s21 }
 0x3f4   : > { %s875_s15 = smov %s723_s18  ;;  %18 = sbr.rel (!%p16_p8) target bundleno = 5 (0x5), region = 77 }
 0x3f9   :  { %437 = vsyncpa [#allocation3], 1 }
 0x3fa   :  { %439 = vsyncpa [#allocation3 + $0x1], 1 }
 0x3fb   :  { %440 = vsyncpa [#allocation4], 1 }
 0x3fc   :  { %442 = vsyncpa [#allocation4 + $0x1], 1 }

</bundles_post_ra>
